<compile_context>
chip_gen: v7x
topology: tpu7x:2x2x1
jax: 0.10.0
libtpu: 0.0.40
codegen_flags: <defaults>
</compile_context>

<pallas_src>
import functools

import jax
import jax.numpy as jnp
from jax.experimental import pallas as pl
from jax.experimental.pallas import tpu as pltpu

SMOOTH = 1e-6
LANES = 128
MAX_TILE_ROWS = 1024  # (1024, 128) f32 = 512 KiB per block


def _bce_dice_kernel(pred_ref, true_ref, out_ref,
                     acc_bce, acc_py, acc_p, acc_y,
                     *, n_elems, tile_rows, tail_valid):
    """Accumulate element-wise partials in VMEM; finalize to a scalar on the last step.

    acc_* are (tile_rows, 128) f32 VMEM accumulators of [bce, p*y, p, y]; cross-lane
    reduction to scalars happens only in the epilogue.
    """
    i = pl.program_id(0)
    last = pl.num_programs(0) - 1

    @pl.when(i == 0)
    def _init():
        acc_bce[...] = jnp.zeros_like(acc_bce)
        acc_py[...] = jnp.zeros_like(acc_py)
        acc_p[...] = jnp.zeros_like(acc_p)
        acc_y[...] = jnp.zeros_like(acc_y)

    def accumulate(valid):
        x = pred_ref[...].astype(jnp.float32)   # logits
        y = true_ref[...].astype(jnp.float32)   # targets in {0, 1}
        if valid is not None:
            # Sanitize first: the tail of the last block may hold unspecified data
            # (and padded zeros must not contribute either).
            x = jnp.where(valid, x, 0.0)
            y = jnp.where(valid, y, 0.0)
        e = jnp.exp(-jnp.abs(x))                 # shared by BCE tail and sigmoid
        # Numerically stable BCE-with-logits: max(x,0) - x*y + log1p(exp(-|x|))
        bce = jnp.maximum(x, 0.0) - x * y + jnp.log1p(e)
        # Stable sigmoid from the same exponential.
        p = jnp.where(x >= 0.0, 1.0, e) / (1.0 + e)
        if valid is not None:
            m = valid.astype(jnp.float32)
            bce = bce * m
            p = p * m          # y is already zeroed where invalid
        acc_bce[...] += bce
        acc_py[...] += p * y
        acc_p[...] += p
        acc_y[...] += y

    tile_elems = tile_rows * LANES
    if tail_valid == tile_elems:
        # Every block is completely valid: no masking anywhere (fast path, traced once).
        accumulate(None)
    else:
        @pl.when(i < last)
        def _full_tiles():
            accumulate(None)

        @pl.when(i == last)
        def _partial_tile():
            row = jax.lax.broadcasted_iota(jnp.int32, (tile_rows, LANES), 0)
            col = jax.lax.broadcasted_iota(jnp.int32, (tile_rows, LANES), 1)
            accumulate(row * LANES + col < tail_valid)

    @pl.when(i == last)
    def _finalize():
        n = jnp.float32(n_elems)
        s_bce = jnp.sum(acc_bce[...])
        s_py = jnp.sum(acc_py[...])
        s_p = jnp.sum(acc_p[...])
        s_y = jnp.sum(acc_y[...])

        bce_loss = s_bce / n  # BCEWithLogitsLoss default reduction='mean'

        # Dice term 1: sum(p*y) / sum(p + y)
        loss1 = (s_py + SMOOTH) / (s_p + s_y + SMOOTH)
        # Dice term 2 on complements:
        #   sum((1-p)(1-y))  = N - sum(p) - sum(y) + sum(p*y)
        #   sum((1-p)+(1-y)) = 2N - sum(p) - sum(y)
        loss2 = (n - s_p - s_y + s_py + SMOOTH) / (2.0 * n - s_p - s_y + SMOOTH)

        out_ref[0] = bce_loss + (1.0 - loss1 - loss2)


def bce_dice_loss(y_pred, y_true):
    assert y_pred.shape == y_true.shape, "y_pred and y_true must have identical shapes"
    n_elems = int(y_pred.size)

    flat_p = y_pred.reshape(-1)
    flat_t = y_true.reshape(-1)

    # Pad (only if needed) to a multiple of one (8, 128) row group: at most 1023 elements.
    min_chunk = 8 * LANES
    padded = pl.cdiv(n_elems, min_chunk) * min_chunk
    pad = padded - n_elems
    if pad:
        flat_p = jnp.pad(flat_p, (0, pad))
        flat_t = jnp.pad(flat_t, (0, pad))

    rows = padded // LANES                      # multiple of 8
    tile_rows = min(MAX_TILE_ROWS, rows)        # multiple of 8, <= rows
    num_tiles = pl.cdiv(rows, tile_rows)
    tile_elems = tile_rows * LANES
    # Number of valid (non-padding) elements covered by the last grid step.
    tail_valid = n_elems - (num_tiles - 1) * tile_elems

    p2 = flat_p.reshape(rows, LANES)
    t2 = flat_t.reshape(rows, LANES)

    tile_spec = pl.BlockSpec((tile_rows, LANES), lambda i: (i, 0))

    out = pl.pallas_call(
        functools.partial(_bce_dice_kernel, n_elems=n_elems,
                          tile_rows=tile_rows, tail_valid=tail_valid),
        out_shape=jax.ShapeDtypeStruct((1,), jnp.float32),
        grid_spec=pltpu.PrefetchScalarGridSpec(
            num_scalar_prefetch=0,
            grid=(num_tiles,),
            in_specs=[tile_spec, tile_spec],
            out_specs=pl.BlockSpec(memory_space=pltpu.SMEM),
            scratch_shapes=[pltpu.VMEM((tile_rows, LANES), jnp.float32)
                            for _ in range(4)],
        ),
        compiler_params=pltpu.CompilerParams(
            dimension_semantics=("arbitrary",),  # sequential reduction over tiles
        ),
    )(p2, t2)
    return out[0]


def _reference(y_pred, y_true):
    x = y_pred.astype(jnp.float32)
    y = y_true.astype(jnp.float32)
    p = jax.nn.sigmoid(x)
    bce = jnp.mean(jnp.maximum(x, 0.0) - x * y + jnp.log1p(jnp.exp(-jnp.abs(x))))
    loss1 = (jnp.sum(p * y) + SMOOTH) / (jnp.sum(p + y) + SMOOTH)
    loss2 = (jnp.sum((1 - p) * (1 - y)) + SMOOTH) / (jnp.sum((1 - p) + (1 - y)) + SMOOTH)
    return bce + (1.0 - loss1 - loss2)


if __name__ == "__main__":
    key = jax.random.PRNGKey(0)

    # Case 1: tile-aligned NCHW logits / binary targets.
    k1, k2, k3, k4 = jax.random.split(key, 4)
    shape = (2, 4, 16, 16)
    y_pred = jax.random.normal(k1, shape, dtype=jnp.float32)
    y_true = (jax.random.uniform(k2, shape) > 0.5).astype(jnp.float32)

    loss = bce_dice_loss(y_pred, y_true)
    jax.block_until_ready(loss)
    ref = _reference(y_pred, y_true)
    assert jnp.allclose(loss, ref, atol=1e-5, rtol=1e-5), (loss, ref)

    # Case 2: non-aligned shape, exercises the in-kernel iota mask / padding path.
    shape2 = (2, 3, 7, 9)
    y_pred2 = jax.random.normal(k3, shape2, dtype=jnp.float32)
    y_true2 = (jax.random.uniform(k4, shape2) > 0.5).astype(jnp.float32)

    loss2 = bce_dice_loss(y_pred2, y_true2)
    jax.block_until_ready(loss2)
    ref2 = _reference(y_pred2, y_true2)
    assert jnp.allclose(loss2, ref2, atol=1e-5, rtol=1e-5), (loss2, ref2)

    print("KERNEL_OK")
</pallas_src>

<mosaic_0001>
module attributes {stable_mosaic.version = 11 : i64} {
  func.func @_bce_dice_kernel(%arg0: i32, %arg1: memref<16x128xf32, #tpu.memory_space<vmem>>, %arg2: memref<16x128xf32, #tpu.memory_space<vmem>>, %arg3: memref<1xf32, #tpu.memory_space<smem>>, %arg4: memref<16x128xf32, #tpu.memory_space<vmem>>, %arg5: memref<16x128xf32, #tpu.memory_space<vmem>>, %arg6: memref<16x128xf32, #tpu.memory_space<vmem>>, %arg7: memref<16x128xf32, #tpu.memory_space<vmem>>) attributes {dimension_semantics = [#tpu.dimension_semantics<arbitrary>], iteration_bounds = array<i64: 1>, scalar_prefetch = 0 : i64, scratch_operands = 4 : i64, tpu.core_type = #tpu.core_type<tc>, window_params = [{transform_indices = @transform_0, window_bounds = array<i64: 16, 128>}, {transform_indices = @transform_1, window_bounds = array<i64: 16, 128>}, {transform_indices = @transform_2, window_bounds = array<i64: 1>}]} {
    %c0_i32 = arith.constant 0 : i32
    %0 = arith.cmpi eq, %arg0, %c0_i32 : i32
    %1 = arith.extui %0 : i1 to i32
    %c0_i32_0 = arith.constant 0 : i32
    %2 = arith.cmpi ne, %1, %c0_i32_0 : i32
    scf.if %2 {
      %cst_26 = arith.constant 0.000000e+00 : f32
      %38 = vector.broadcast %cst_26 : f32 to vector<16x128xf32>
      %c0_27 = arith.constant 0 : index
      %c0_28 = arith.constant 0 : index
      %39 = vector.load %arg4[%c0_27, %c0_28] : memref<16x128xf32, #tpu.memory_space<vmem>>, vector<16x128xf32>
      tpu.vector_store %arg4[%c0_27, %c0_28], %38 {strides = array<i32>} : memref<16x128xf32, #tpu.memory_space<vmem>>, vector<16x128xf32>,
      %cst_29 = arith.constant 0.000000e+00 : f32
      %40 = vector.broadcast %cst_29 : f32 to vector<16x128xf32>
      %c0_30 = arith.constant 0 : index
      %c0_31 = arith.constant 0 : index
      %41 = vector.load %arg5[%c0_30, %c0_31] : memref<16x128xf32, #tpu.memory_space<vmem>>, vector<16x128xf32>
      tpu.vector_store %arg5[%c0_30, %c0_31], %40 {strides = array<i32>} : memref<16x128xf32, #tpu.memory_space<vmem>>, vector<16x128xf32>,
      %cst_32 = arith.constant 0.000000e+00 : f32
      %42 = vector.broadcast %cst_32 : f32 to vector<16x128xf32>
      %c0_33 = arith.constant 0 : index
      %c0_34 = arith.constant 0 : index
      %43 = vector.load %arg6[%c0_33, %c0_34] : memref<16x128xf32, #tpu.memory_space<vmem>>, vector<16x128xf32>
      tpu.vector_store %arg6[%c0_33, %c0_34], %42 {strides = array<i32>} : memref<16x128xf32, #tpu.memory_space<vmem>>, vector<16x128xf32>,
      %cst_35 = arith.constant 0.000000e+00 : f32
      %44 = vector.broadcast %cst_35 : f32 to vector<16x128xf32>
      %c0_36 = arith.constant 0 : index
      %c0_37 = arith.constant 0 : index
      %45 = vector.load %arg7[%c0_36, %c0_37] : memref<16x128xf32, #tpu.memory_space<vmem>>, vector<16x128xf32>
      tpu.vector_store %arg7[%c0_36, %c0_37], %44 {strides = array<i32>} : memref<16x128xf32, #tpu.memory_space<vmem>>, vector<16x128xf32>,
    } else {
    }
    %c0 = arith.constant 0 : index
    %c0_1 = arith.constant 0 : index
    %3 = vector.load %arg1[%c0, %c0_1] : memref<16x128xf32, #tpu.memory_space<vmem>>, vector<16x128xf32>
    %c0_2 = arith.constant 0 : index
    %c0_3 = arith.constant 0 : index
    %4 = vector.load %arg2[%c0_2, %c0_3] : memref<16x128xf32, #tpu.memory_space<vmem>>, vector<16x128xf32>
    %5 = math.absf %3 : vector<16x128xf32>
    %cst = arith.constant 0.000000e+00 : f32
    %6 = vector.broadcast %cst : f32 to vector<16x128xf32>
    %7 = arith.subf %6, %5 : vector<16x128xf32>
    %8 = math.exp %7 : vector<16x128xf32>
    %cst_4 = arith.constant 0.000000e+00 : f32
    %9 = vector.broadcast %cst_4 : f32 to vector<16x128xf32>
    %10 = arith.maximumf %3, %9 : vector<16x128xf32>
    %11 = arith.mulf %3, %4 : vector<16x128xf32>
    %12 = arith.subf %10, %11 : vector<16x128xf32>
    %13 = math.log1p %8 : vector<16x128xf32>
    %14 = arith.addf %12, %13 : vector<16x128xf32>
    %cst_5 = arith.constant 0.000000e+00 : f32
    %15 = vector.broadcast %cst_5 : f32 to vector<16x128xf32>
    %16 = arith.cmpf oge, %3, %15 : vector<16x128xf32>
    %cst_6 = arith.constant 1.000000e+00 : f32
    %17 = vector.broadcast %cst_6 : f32 to vector<16x128xf32>
    %18 = arith.select %16, %17, %8 : vector<16x128xi1>, vector<16x128xf32>
    %cst_7 = arith.constant 1.000000e+00 : f32
    %19 = vector.broadcast %cst_7 : f32 to vector<16x128xf32>
    %20 = arith.addf %19, %8 : vector<16x128xf32>
    %21 = arith.divf %18, %20 : vector<16x128xf32>
    %c0_8 = arith.constant 0 : index
    %c0_9 = arith.constant 0 : index
    %22 = vector.load %arg4[%c0_8, %c0_9] : memref<16x128xf32, #tpu.memory_space<vmem>>, vector<16x128xf32>
    %23 = arith.addf %22, %14 : vector<16x128xf32>
    %c0_10 = arith.constant 0 : index
    %c0_11 = arith.constant 0 : index
    %24 = vector.load %arg4[%c0_10, %c0_11] : memref<16x128xf32, #tpu.memory_space<vmem>>, vector<16x128xf32>
    tpu.vector_store %arg4[%c0_10, %c0_11], %23 {strides = array<i32>} : memref<16x128xf32, #tpu.memory_space<vmem>>, vector<16x128xf32>,
    %c0_12 = arith.constant 0 : index
    %c0_13 = arith.constant 0 : index
    %25 = vector.load %arg5[%c0_12, %c0_13] : memref<16x128xf32, #tpu.memory_space<vmem>>, vector<16x128xf32>
    %26 = arith.mulf %21, %4 : vector<16x128xf32>
    %27 = arith.addf %25, %26 : vector<16x128xf32>
    %c0_14 = arith.constant 0 : index
    %c0_15 = arith.constant 0 : index
    %28 = vector.load %arg5[%c0_14, %c0_15] : memref<16x128xf32, #tpu.memory_space<vmem>>, vector<16x128xf32>
    tpu.vector_store %arg5[%c0_14, %c0_15], %27 {strides = array<i32>} : memref<16x128xf32, #tpu.memory_space<vmem>>, vector<16x128xf32>,
    %c0_16 = arith.constant 0 : index
    %c0_17 = arith.constant 0 : index
    %29 = vector.load %arg6[%c0_16, %c0_17] : memref<16x128xf32, #tpu.memory_space<vmem>>, vector<16x128xf32>
    %30 = arith.addf %29, %21 : vector<16x128xf32>
    %c0_18 = arith.constant 0 : index
    %c0_19 = arith.constant 0 : index
    %31 = vector.load %arg6[%c0_18, %c0_19] : memref<16x128xf32, #tpu.memory_space<vmem>>, vector<16x128xf32>
    tpu.vector_store %arg6[%c0_18, %c0_19], %30 {strides = array<i32>} : memref<16x128xf32, #tpu.memory_space<vmem>>, vector<16x128xf32>,
    %c0_20 = arith.constant 0 : index
    %c0_21 = arith.constant 0 : index
    %32 = vector.load %arg7[%c0_20, %c0_21] : memref<16x128xf32, #tpu.memory_space<vmem>>, vector<16x128xf32>
    %33 = arith.addf %32, %4 : vector<16x128xf32>
    %c0_22 = arith.constant 0 : index
    %c0_23 = arith.constant 0 : index
    %34 = vector.load %arg7[%c0_22, %c0_23] : memref<16x128xf32, #tpu.memory_space<vmem>>, vector<16x128xf32>
    tpu.vector_store %arg7[%c0_22, %c0_23], %33 {strides = array<i32>} : memref<16x128xf32, #tpu.memory_space<vmem>>, vector<16x128xf32>,
    %c0_i32_24 = arith.constant 0 : i32
    %35 = arith.cmpi eq, %arg0, %c0_i32_24 : i32
    %36 = arith.extui %35 : i1 to i32
    %c0_i32_25 = arith.constant 0 : i32
    %37 = arith.cmpi ne, %36, %c0_i32_25 : i32
    scf.if %37 {
      %c0_26 = arith.constant 0 : index
      %c0_27 = arith.constant 0 : index
      %38 = vector.load %arg4[%c0_26, %c0_27] : memref<16x128xf32, #tpu.memory_space<vmem>>, vector<16x128xf32>
      %39 = vector.shape_cast %38 : vector<16x128xf32> to vector<1x16x128xf32>
      %cst_28 = arith.constant dense<0.000000e+00> : vector<1xf32>
      %40 = vector.multi_reduction <add>, %39, %cst_28 [1, 2] : vector<1x16x128xf32> to vector<1xf32>
      %41 = vector.shape_cast %40 : vector<1xf32> to vector<1x1x1xf32>
      %42 = vector.extract %41[0, 0, 0] : f32 from vector<1x1x1xf32>
      %c0_29 = arith.constant 0 : index
      %c0_30 = arith.constant 0 : index
      %43 = vector.load %arg5[%c0_29, %c0_30] : memref<16x128xf32, #tpu.memory_space<vmem>>, vector<16x128xf32>
      %44 = vector.shape_cast %43 : vector<16x128xf32> to vector<1x16x128xf32>
      %cst_31 = arith.constant dense<0.000000e+00> : vector<1xf32>
      %45 = vector.multi_reduction <add>, %44, %cst_31 [1, 2] : vector<1x16x128xf32> to vector<1xf32>
      %46 = vector.shape_cast %45 : vector<1xf32> to vector<1x1x1xf32>
      %47 = vector.extract %46[0, 0, 0] : f32 from vector<1x1x1xf32>
      %c0_32 = arith.constant 0 : index
      %c0_33 = arith.constant 0 : index
      %48 = vector.load %arg6[%c0_32, %c0_33] : memref<16x128xf32, #tpu.memory_space<vmem>>, vector<16x128xf32>
      %49 = vector.shape_cast %48 : vector<16x128xf32> to vector<1x16x128xf32>
      %cst_34 = arith.constant dense<0.000000e+00> : vector<1xf32>
      %50 = vector.multi_reduction <add>, %49, %cst_34 [1, 2] : vector<1x16x128xf32> to vector<1xf32>
      %51 = vector.shape_cast %50 : vector<1xf32> to vector<1x1x1xf32>
      %52 = vector.extract %51[0, 0, 0] : f32 from vector<1x1x1xf32>
      %c0_35 = arith.constant 0 : index
      %c0_36 = arith.constant 0 : index
      %53 = vector.load %arg7[%c0_35, %c0_36] : memref<16x128xf32, #tpu.memory_space<vmem>>, vector<16x128xf32>
      %54 = vector.shape_cast %53 : vector<16x128xf32> to vector<1x16x128xf32>
      %cst_37 = arith.constant dense<0.000000e+00> : vector<1xf32>
      %55 = vector.multi_reduction <add>, %54, %cst_37 [1, 2] : vector<1x16x128xf32> to vector<1xf32>
      %56 = vector.shape_cast %55 : vector<1xf32> to vector<1x1x1xf32>
      %57 = vector.extract %56[0, 0, 0] : f32 from vector<1x1x1xf32>
      %cst_38 = arith.constant 2.048000e+03 : f32
      %58 = arith.divf %42, %cst_38 : f32
      %cst_39 = arith.constant 9.99999997E-7 : f32
      %59 = arith.addf %47, %cst_39 : f32
      %60 = arith.addf %52, %57 : f32
      %cst_40 = arith.constant 9.99999997E-7 : f32
      %61 = arith.addf %60, %cst_40 : f32
      %62 = arith.divf %59, %61 : f32
      %cst_41 = arith.constant 2.048000e+03 : f32
      %63 = arith.subf %cst_41, %52 : f32
      %64 = arith.subf %63, %57 : f32
      %65 = arith.addf %64, %47 : f32
      %cst_42 = arith.constant 9.99999997E-7 : f32
      %66 = arith.addf %65, %cst_42 : f32
      %cst_43 = arith.constant 2.000000e+00 : f32
      %cst_44 = arith.constant 2.048000e+03 : f32
      %67 = arith.mulf %cst_43, %cst_44 : f32
      %68 = arith.subf %67, %52 : f32
      %69 = arith.subf %68, %57 : f32
      %cst_45 = arith.constant 9.99999997E-7 : f32
      %70 = arith.addf %69, %cst_45 : f32
      %71 = arith.divf %66, %70 : f32
      %cst_46 = arith.constant 1.000000e+00 : f32
      %72 = arith.subf %cst_46, %62 : f32
      %73 = arith.subf %72, %71 : f32
      %74 = arith.addf %58, %73 : f32
      %c0_47 = arith.constant 0 : index
      %75 = memref.load %arg3[%c0_47] : memref<1xf32, #tpu.memory_space<smem>>
      memref.store %74, %arg3[%c0_47] : memref<1xf32, #tpu.memory_space<smem>>
    } else {
    }
    return
  }
  func.func @transform_0(%arg0: i32) -> (i32, i32) {
    %c0_i32 = arith.constant 0 : i32
    %c0_i32_0 = arith.constant 0 : i32
    return %arg0, %c0_i32 : i32, i32
  }
  func.func @transform_1(%arg0: i32) -> (i32, i32) {
    %c0_i32 = arith.constant 0 : i32
    %c0_i32_0 = arith.constant 0 : i32
    return %arg0, %c0_i32 : i32, i32
  }
  func.func @transform_2(%arg0: i32) -> i32 {
    %c0_i32 = arith.constant 0 : i32
    %c0_i32_0 = arith.constant 0 : i32
    return %c0_i32 : i32
  }
}

</mosaic_0001>

<bundles_post_ra>
// kernel: tpu_custom_call.1
= control target key start
LH: loop header
LB: loop body
LE: loop exit
PB: predicated region body
PF: predicated region fallthrough
CT: control target
= control target key end

     0   :  { %7 = vsyncpa [#allocation7], 0  ;;  %s370_s0 = inlined_call_operand.hbm [shape: f32[16,128], index: 0, kind: input, shape index: {}]   ;;  %s371_s1 = inlined_call_operand.hbm [shape: f32[16,128], index: 1, kind: input, shape index: {}]   ;;  %s372_s2 = inlined_call_operand.hbm [shape: f32[1], index: 2, kind: output, shape index: {}]  }
   0x1   :  { %8 = vsyncpa [#allocation10], 0 }
   0x2   :  { %9 = vsyncpa [#allocation8], 0  ;;  %s311_s9 = smov [#allocation6]   ;;  %s251_s13 = scalar_lea.hbm %s370_s0, 256 }
   0x3   :  { %s15_s10 = sshll.u32 %s311_s9, 4  ;;  %p252_p0 = scmp.ne.s32.totalorder %s370_s0, %s251_s13  ;;  %s16_s10 = int_to_ptr.vmem [resolvable:$true] %s15_s10 }
   0x4   :  { %p255_p1 = scmp.lt.u32.totalorder %s251_s13, %s370_s0 }
   0x6   :  { %p257_p2 = pnand %p255_p1, %p252_p0 }
   0x8   :  { %260 = shalt.err (!%p257_p2)
}
   0x9   :  { %s261_s18 = scalar_lea.vmem %s16_s10, 256  ;;  %p266_p4 = scmp.lt.s32.totalorder %s16_s10, %s16_s10 }
   0xa   :  { %p262_p3 = scmp.ne.s32.totalorder %s16_s10, %s261_s18  ;;  %p267_p5 = scmp.lt.s32.totalorder %s261_s18, %s261_s18 }
   0xc   :  { %p268_p6 = por %p267_p5, %p266_p4 }
   0xe   :  { %p269_p7 = pnand %p268_p6, %p262_p3 }
  0x10   :  { %272 = shalt.err (!%p269_p7)
}
  0x11   :  { %s312_s19 = smov 128   ;;  %s313_s20 = smov 8  }
  0x12   :  { %21 = dma.hbm_to_vmem [thread:$0]  %s370_s0, 256, %s16_s10, [#allocation7], %s312_s19, %s312_s19, %s313_s20  }
  0x13   :  { %s314_s23 = smov [#allocation9]   ;;  %s273_s27 = scalar_lea.hbm %s371_s1, 256 }
  0x14   :  { %s27_s24 = sshll.u32 %s314_s23, 4  ;;  %p274_p8 = scmp.ne.s32.totalorder %s371_s1, %s273_s27  ;;  %s28_s24 = int_to_ptr.vmem [resolvable:$true] %s27_s24 }
  0x15   :  { %p277_p9 = scmp.lt.u32.totalorder %s273_s27, %s371_s1 }
  0x17   :  { %p279_p10 = pnand %p277_p9, %p274_p8 }
  0x19   :  { %282 = shalt.err (!%p279_p10)
}
  0x1a   :  { %s283_s4 = scalar_lea.vmem %s28_s24, 256  ;;  %p288_p12 = scmp.lt.s32.totalorder %s28_s24, %s28_s24 }
  0x1b   :  { %p284_p11 = scmp.ne.s32.totalorder %s28_s24, %s283_s4  ;;  %p289_p13 = scmp.lt.s32.totalorder %s283_s4, %s283_s4 }
  0x1d   :  { %p290_p0 = por %p289_p13, %p288_p12 }
  0x1f   :  { %p291_p1 = pnand %p290_p0, %p284_p11 }
  0x21   :  { %294 = shalt.err (!%p291_p1)
}
  0x22   :  { %33 = dma.hbm_to_vmem [thread:$0]  %s371_s1, 256, %s28_s24, [#allocation10], %s312_s19, %s312_s19, %s313_s20  }
  0x23   :  { %305 = dma.done.wait [#allocation7], 256  }
  0x24   :  { %306 = vsyncadd [#allocation7], 4294967040 }
  0x25   :  { %307 = dma.done.wait [#allocation10], 256  }
  0x26   :  { %308 = vsyncadd [#allocation10], 4294967040  ;;  %v52_v0 = vld [vmem:[#allocation6] sm:$0xff]  ;;  %v53_v1 = vld [vmem:[#allocation6 + $0x8] sm:$0xff]  ;;  %s295_s29 = scalar_lea.hbm %s372_s2, 16 }
  0x27   :  { %v56_v2 = vand.u32 2147483647, %v52_v0  ;;  %v57_v3 = vand.u32 2147483647, %v53_v1  ;;  %vm90_vm0 = vcmp.ge.f32.partialorder %v52_v0, 0.0  ;;  %v54_v14 = vld [vmem:[#allocation9] sm:$0xff]  ;;  %p296_p2 = scmp.ne.s32.totalorder %s372_s2, %s295_s29  ;;  %p299_p3 = scmp.lt.u32.totalorder %s295_s29, %s372_s2 }
  0x28   :  { %vm91_vm1 = vcmp.ge.f32.partialorder %v53_v1, 0.0  ;;  %v55_v15 = vld [vmem:[#allocation9 + $0x8] sm:$0xff]  ;;  %v64_v16 = vmax.f32 %v52_v0, 0.0  ;;  %v66_v19 = vmul.f32 %v54_v14, %v52_v0  ;;  %v65_v23 = vmax.f32 %v53_v1, 0.0 }
  0x29   :  { %v58_v4 = vsub.f32 0.0, %v56_v2  ;;  %v59_v5 = vsub.f32 0.0, %v57_v3  ;;  %v67_v24 = vmul.f32 %v55_v15, %v53_v1  ;;  %v167_v42 = vadd.f32 %v55_v15, %v54_v14  ;;  %p301_p4 = pnand %p299_p3, %p296_p2 }
  0x2a   :  { %v68_v32 = vsub.f32 %v64_v16, %v66_v19 }
  0x2b   :  { %v60_v6 = vmul.f32 1.442695, %v58_v4  ;;  %v62_v7 = vmul.f32 1.442695, %v59_v5  ;;  %v69_v35 = vsub.f32 %v65_v23, %v67_v24 }
  0x2d   :  { %235 = vpow2.f32 %v60_v6 }
  0x2e   :  { %237 = vpow2.f32 %v62_v7 }
  0x37   :  { %v236_v8 = vpop.eup %235 }
  0x38   :  { %v238_v9 = vpop.eup %237  ;;  %v70_v10 = vadd.f32 1.0, %v236_v8  ;;  %v73_v12 = vmul.f32 -0.5, %v236_v8  ;;  %v92_v18 = vsel %vm90_vm0, 1.0, %v236_v8  ;;  %v76_v20 = vand.u32 2147483647, %v236_v8 }
  0x39   :  { %v79_v11 = vadd.f32 1.0, %v238_v9  ;;  %v82_v13 = vmul.f32 -0.5, %v238_v9  ;;  %v93_v22 = vsel %vm91_vm1, 1.0, %v238_v9  ;;  %v85_v25 = vand.u32 2147483647, %v238_v9 }
  0x3a   :  { %239 = vrcp.f32 %v70_v10  ;;  %v74_v17 = vadd.f32 1.0, %v73_v12  ;;  %vm77_vm2 = vcmp.lt.f32.partialorder %v76_v20, 0.0004427343 }
  0x3b   :  { %241 = vrcp.f32 %v79_v11  ;;  %v83_v21 = vadd.f32 1.0, %v82_v13  ;;  %vm86_vm3 = vcmp.lt.f32.partialorder %v85_v25, 0.0004427343 }
  0x3c   :  { %243 = vlog2.f32 %v70_v10  ;;  %v75_v29 = vmul.f32 %v236_v8, %v74_v17 }
  0x3d   :  { %245 = vlog2.f32 %v79_v11  ;;  %v84_v33 = vmul.f32 %v238_v9, %v83_v21 }
  0x44   :  { %v240_v26 = vpop.eup %239 }
  0x45   :  { %v242_v27 = vpop.eup %241  ;;  %v97_v28 = vmul.f32 %v240_v26, %v92_v18 }
  0x46   :  { %v244_v30 = vpop.eup %243  ;;  %v99_v31 = vmul.f32 %v242_v27, %v93_v22 }
  0x47   :  { %v246_v34 = vpop.eup %245  ;;  %v72_v36 = vmul.f32 0.6931472, %v244_v30  ;;  %v108_v44 = vmul.f32 %v97_v28, %v54_v14 }
  0x48   :  { %v155_v37 = vadd.f32 %v99_v31, %v97_v28  ;;  %v81_v38 = vmul.f32 0.6931472, %v246_v34  ;;  %v109_v45 = vmul.f32 %v99_v31, %v55_v15 }
  0x49   :  { %v78_v39 = vsel %vm77_vm2, %v75_v29, %v72_v36 }
  0x4a   :  { %156 = vadd.xlane.f32.xlu1 %v155_v37  ;;  %v87_v40 = vsel %vm86_vm3, %v84_v33, %v81_v38  ;;  %v88_v41 = vadd.f32 %v78_v39, %v68_v32  ;;  %v143_v47 = vadd.f32 %v109_v45, %v108_v44 }
  0x4b   :  { %v89_v43 = vadd.f32 %v87_v40, %v69_v35 }
  0x4d   :  { %v131_v46 = vadd.f32 %v89_v43, %v88_v41 }
  0x4e   :  { %168 = vadd.xlane.f32.xlu1 %v167_v42 }
  0x4f   :  { %132 = vadd.xlane.f32.xlu0 %v131_v46 }
  0x53   :  { %144 = vadd.xlane.f32.xlu0 %v143_v47 }
  0xd7   :  { %v157_v48 = vpop.xlane.xlu1 %156 }
  0xd8   :  { %v158_v49 = vrot.slane %v157_v48, 4 }
  0xda   :  { %v159_v51 = vadd.f32 %v158_v49, %v157_v48 }
  0xdb   :  { %v169_v50 = vpop.xlane.xlu1 %168 }
  0xdc   :  { %v133_v52 = vpop.xlane.xlu0 %132  ;;  %v170_v53 = vrot.slane %v169_v50, 4  ;;  %v160_v57 = vrot.slane %v159_v51, 2 }
  0xdd   :  { %v134_v54 = vrot.slane %v133_v52, 4 }
  0xde   :  { %v171_v55 = vadd.f32 %v170_v53, %v169_v50  ;;  %v161_v0 = vadd.f32 %v160_v57, %v159_v51 }
  0xdf   :  { %v135_v56 = vadd.f32 %v134_v54, %v133_v52 }
  0xe0   :  { %v145_v58 = vpop.xlane.xlu0 %144  ;;  %v172_v60 = vrot.slane %v171_v55, 2  ;;  %v162_v6 = vrot.slane %v161_v0, 1 }
  0xe1   :  { %v136_v59 = vrot.slane %v135_v56, 2  ;;  %v146_v61 = vrot.slane %v145_v58, 4 }
  0xe2   :  { %v173_v1 = vadd.f32 %v172_v60, %v171_v55  ;;  %v163_v10 = vadd.f32 %v162_v6, %v161_v0 }
  0xe3   :  { %v147_v62 = vadd.f32 %v146_v61, %v145_v58  ;;  %v137_v63 = vadd.f32 %v136_v59, %v135_v56 }
  0xe4   :  { %v174_v8 = vrot.slane %v173_v1, 1 }
  0xe5   :  { %v148_v2 = vrot.slane %v147_v62, 2  ;;  %v138_v3 = vrot.slane %v137_v63, 1 }
  0xe6   :  { %v175_v11 = vadd.f32 %v174_v8, %v173_v1 }
  0xe7   :  { %v149_v4 = vadd.f32 %v148_v2, %v147_v62  ;;  %v139_v5 = vadd.f32 %v138_v3, %v137_v63 }
  0xe9   :  { %218 = vpush %v139_v5  ;;  %v150_v7 = vrot.slane %v149_v4, 1 }
  0xeb   :  { %v151_v9 = vadd.f32 %v150_v7, %v149_v4 }
  0xed   :  { %220 = vpush %v151_v9 }
  0xee   :  { %222 = vpush %v163_v10 }
  0xef   :  { %224 = vpush %v175_v11 }
 0x11a   :  { %s355_s1 = spop %218 }
 0x11b   :  { %s179_s24 = smul.f32 0.00048828125, %s355_s1 }
 0x11e   :  { %s221_s6 = spop %220 }
 0x11f   :  { %s223_s7 = spop %222  ;;  %s180_s17 = sadd.f32 1e-06, %s221_s6 }
 0x120   :  { %s225_s8 = spop %224  ;;  %s191_s9 = ssub.f32 4096.0, %s223_s7 }
 0x121   :  { %s181_s10 = sadd.f32 %s225_s8, %s223_s7 }
 0x122   :  { %s192_s12 = ssub.f32 %s191_s9, %s225_s8 }
 0x123   :  { %s182_s11 = sadd.f32 1e-06, %s181_s10 }
 0x124   :  { %s193_s13 = sadd.f32 1e-06, %s192_s12 }
 0x125   :  { %v183_v12 = vstv %s182_s11  ;;  %s187_s14 = ssub.f32 2048.0, %s223_s7 }
 0x126   :  { %247 = vrcp.f32 %v183_v12  ;;  %v194_v13 = vstv %s193_s13 }
 0x127   :  { %249 = vrcp.f32 %v194_v13  ;;  %s188_s15 = ssub.f32 %s187_s14, %s225_s8 }
 0x129   :  { %s189_s16 = sadd.f32 %s221_s6, %s188_s15 }
 0x12b   :  { %s190_s20 = sadd.f32 1e-06, %s189_s16 }
 0x130   :  { %v248_v14 = vpop.eup %247 }
 0x131   :  { %226 = vpush %v248_v14  ;;  %v250_v15 = vpop.eup %249 }
 0x132   :  { %228 = vpush %v250_v15 }
 0x162   :  { %s227_s18 = spop %226 }
 0x163   :  { %s186_s19 = smul.f32 %s227_s18, %s180_s17  ;;  %s229_s22 = spop %228 }
 0x164   :  { %s197_s23 = smul.f32 %s229_s22, %s190_s20 }
 0x165   :  { %s198_s21 = ssub.f32 1.0, %s186_s19 }
 0x167   :  { %s199_s25 = ssub.f32 %s198_s21, %s197_s23 }
 0x169   :  { %s200_s26 = sadd.f32 %s199_s25, %s179_s24 }
 0x16b   :  { %202 = sst [smem:[#allocation11]] %s200_s26 }
 0x16c   :  { %304 = shalt.err (!%p301_p4)
}
 0x16d   :  { %s315_s5 = smov [#allocation11]  }
 0x16e   :  { %210 = dma.smem_to_hbm %s315_s5, 16, %s372_s2, [#allocation8]  }
 0x16f   :  { %309 = dma.done.wait [#allocation8], 16  }
 0x170   :  { %310 = vsyncadd [#allocation8], 4294967280 }
 0x171   :  { %214 = sfence }
 0x172   :  { %215 = vsyncpa [#allocation7], 1 }
 0x173   :  { %216 = vsyncpa [#allocation10], 1 }
 0x174   :  { %217 = vsyncpa [#allocation8], 1 }

</bundles_post_ra>
